<compile_context>
chip_gen: v6e
topology: v6e:2x2x1
jax: 0.10.0
libtpu: 0.0.40
codegen_flags: <defaults>
</compile_context>

<pallas_src>
import functools

import jax
import jax.numpy as jnp
from jax import lax
from jax.experimental import pallas as pl
from jax.experimental.pallas import tpu as pltpu

MARGIN = 0.3
NORMALIZE_FEATURE = True
SQUARED = False

# Gram-matmul operand dtype. jnp.bfloat16 gives ~3-4x MXU throughput on v6e/v7x
# (f32 accumulation kept) and halves streamed-tile VMEM, at ~1e-3 abs error on
# distances under the 2-2g cancellation (fine for training, not bit-comparable
# to the f32 reference). Kept at f32 so the in-script check matches the
# PyTorch/f32 reference tightly.
GRAM_DTYPE = jnp.float32


def _round_up(a: int, b: int) -> int:
    return -(-a // b) * b


def _triplet_kernel(x_ref, xt_ref, lab_col_ref, lab_row_ref, pc_ref, out_ref,
                    gmin_ref, gmax_ref, *, n_real, tile_m, tile_n):
    i = pl.program_id(0)          # row-tile index    ("parallel")
    j = pl.program_id(1)          # column-tile index ("arbitrary" / reduction)

    # ---- init running extrema for this row tile -----------------------------
    @pl.when(j == 0)
    def _():
        gmin_ref[...] = jnp.full(gmin_ref.shape, jnp.inf, jnp.float32)
        gmax_ref[...] = jnp.full(gmax_ref.shape, -jnp.inf, jnp.float32)

    # ---- Gram tile on the MXU: plain (TM,Dp) x (Dp,TN) matmul ---------------
    gram = jnp.dot(x_ref[...], xt_ref[...],
                   preferred_element_type=jnp.float32)        # (TM, TN) f32

    # ---- masks from (TM,1) vs (1,TN) broadcast compares ----------------------
    row_ids = lax.broadcasted_iota(jnp.int32, (tile_m, 1), 0) + i * tile_m
    col_ids = lax.broadcasted_iota(jnp.int32, (1, tile_n), 1) + j * tile_n
    eye = row_ids == col_ids
    valid_col = col_ids < n_real
    same = lab_col_ref[...] == lab_row_ref[...]               # (TM, TN)
    is_pos = same & valid_col & (~eye)                        # positives excl. self
    is_neg = (~same) & valid_col

    # ---- online batch-hard mining directly on the Gram matrix ----------------
    # ||x_i|| == 1  =>  dist = sqrt(max(2 - 2*gram, eps)) is monotone decreasing
    # in gram, so: hardest positive (max dist) == min gram over positives,
    #              hardest negative (min dist) == max gram over negatives.
    gmin_ref[...] = jnp.minimum(
        gmin_ref[...],
        jnp.min(jnp.where(is_pos, gram, jnp.inf), axis=1, keepdims=True))
    gmax_ref[...] = jnp.maximum(
        gmax_ref[...],
        jnp.max(jnp.where(is_neg, gram, -jnp.inf), axis=1, keepdims=True))

    # ---- finalize this row tile: sqrt only on the (TM,1) extrema -------------
    @pl.when(j == pl.num_programs(1) - 1)
    def _():
        pos_count = pc_ref[...]                               # (TM,1), incl. self
        has_pos = pos_count > 1.0
        has_neg = pos_count < jnp.float32(n_real)
        valid_row = row_ids < n_real

        d_ap = jnp.sqrt(jnp.maximum(2.0 - 2.0 * gmin_ref[...], 1e-12))
        d_an = jnp.sqrt(jnp.maximum(2.0 - 2.0 * gmax_ref[...], 1e-12))
        if SQUARED:
            d_ap = d_ap * d_ap
            d_an = d_an * d_an
        d_ap = jnp.where(has_pos, d_ap, 0.0)
        d_an = jnp.where(has_neg, d_an, jnp.inf)

        loss = jnp.maximum(d_ap - d_an + jnp.float32(MARGIN), 0.0)
        out_ref[...] = jnp.where(valid_row, loss, 0.0)        # padded rows -> 0


def batch_hard_triplet_loss(embeddings: jax.Array, labels: jax.Array) -> jax.Array:
    """embeddings: (N, D) float, labels: (N,) int -> scalar float32 loss."""
    N, D = embeddings.shape
    x = embeddings.astype(jnp.float32)
    if NORMALIZE_FEATURE:
        # F.normalize(p=2, dim=1, eps=1e-12), done once in XLA at HBM roofline.
        norm = jnp.sqrt(jnp.sum(x * x, axis=1, keepdims=True))
        x = x / jnp.maximum(norm, 1e-12)
    # TODO(synk): an all-zero embedding row normalizes to 0 and the unit-norm
    # shortcut then gives dist=sqrt(2) vs the reference's 1 (degenerate input).

    sub_m = 16 if GRAM_DTYPE == jnp.bfloat16 else 8   # bf16 packs 2 rows/sublane
    tile_m = min(128, _round_up(N, sub_m))            # 128 already fills the MXU
    tile_n = min(512, _round_up(N, 128))              # lane-dense Gram columns
    n_rows = _round_up(N, tile_m)
    n_cols = _round_up(N, tile_n)
    d_pad = _round_up(D, 128)

    # Two separately padded copies: row tiles (N,D) and the transposed matrix
    # (D,N), so the kernel issues a plain (TM,Dp)x(Dp,TN) MXU matmul.
    xr = jnp.zeros((n_rows, d_pad), GRAM_DTYPE).at[:N, :D].set(x.astype(GRAM_DTYPE))
    xt = jnp.zeros((d_pad, n_cols), GRAM_DTYPE).at[:D, :N].set(x.T.astype(GRAM_DTYPE))

    lab = labels.astype(jnp.int32)
    lab_col = jnp.full((n_rows, 1), -1, jnp.int32).at[:N, 0].set(lab)
    lab_row = jnp.full((1, n_cols), -2, jnp.int32).at[0, :N].set(lab)

    # per-row positive count (incl. self), precomputed in XLA -> both gates.
    pos_count = jnp.sum((lab[:, None] == lab[None, :]).astype(jnp.float32), axis=1)
    pc = jnp.zeros((n_rows, 1), jnp.float32).at[:N, 0].set(pos_count)

    grid = (n_rows // tile_m, n_cols // tile_n)

    itm = jnp.dtype(GRAM_DTYPE).itemsize
    est = (2 * tile_m * d_pad * itm          # streamed row tile (double-buffered)
           + 2 * d_pad * tile_n * itm        # streamed x^T column tile
           + 2 * tile_n * 4                  # label row tile
           + 6 * tile_m * tile_n * 4         # gram + mask/where temporaries
           + 16 * tile_m * 4                 # (TM,1) labels / pc / out / scratch
           + (2 << 20))                      # headroom
    try:
        vmem_cap = pltpu.get_tpu_info().vmem_capacity_bytes
    except Exception:
        vmem_cap = 64 << 20                  # v7x per-TC VMEM as the safe floor
    vmem_limit = int(min(max(est, 8 << 20), (vmem_cap * 3) // 4))

    kernel = functools.partial(_triplet_kernel, n_real=N,
                               tile_m=tile_m, tile_n=tile_n)

    per_row = pl.pallas_call(
        kernel,
        out_shape=jax.ShapeDtypeStruct((n_rows, 1), jnp.float32),
        grid_spec=pltpu.PrefetchScalarGridSpec(
            num_scalar_prefetch=0,
            grid=grid,
            in_specs=[
                pl.BlockSpec((tile_m, d_pad), lambda i, j: (i, 0)),   # x row tile
                pl.BlockSpec((d_pad, tile_n), lambda i, j: (0, j)),   # x^T col tile
                pl.BlockSpec((tile_m, 1), lambda i, j: (i, 0)),       # row labels
                pl.BlockSpec((1, tile_n), lambda i, j: (0, j)),       # col labels
                pl.BlockSpec((tile_m, 1), lambda i, j: (i, 0)),       # pos_count
            ],
            out_specs=pl.BlockSpec((tile_m, 1), lambda i, j: (i, 0)), # per-row loss
            scratch_shapes=[
                pltpu.VMEM((tile_m, 1), jnp.float32),   # running min gram (pos)
                pltpu.VMEM((tile_m, 1), jnp.float32),   # running max gram (neg)
            ],
        ),
        compiler_params=pltpu.CompilerParams(
            # row tiles are independent -> "parallel" (v7x dual-TC sharding);
            # column axis carries the per-row running extrema -> "arbitrary".
            dimension_semantics=("parallel", "arbitrary"),
            vmem_limit_bytes=vmem_limit,
        ),
    )(xr, xt, lab_col, lab_row, pc)

    # padded rows contribute exactly 0 -> mean over the real batch size.
    return jnp.sum(per_row) * jnp.float32(1.0 / N)


def _reference(embeddings, labels):
    """Pure-JAX reference mirroring the PyTorch module (sanity check)."""
    x = embeddings.astype(jnp.float32)
    if NORMALIZE_FEATURE:
        x = x / jnp.maximum(jnp.linalg.norm(x, axis=1, keepdims=True), 1e-12)
    sq = jnp.sum(x * x, axis=1, keepdims=True)
    dist = jnp.sqrt(jnp.maximum(sq + sq.T - 2.0 * (x @ x.T), 1e-12))
    if SQUARED:
        dist = dist ** 2
    N = x.shape[0]
    is_pos = labels[:, None] == labels[None, :]
    eye = jnp.eye(N, dtype=bool)
    d_ap = jnp.max(jnp.where(is_pos & ~eye, dist, -jnp.inf), axis=1)
    d_ap = jnp.where(jnp.sum(is_pos, axis=1) > 1, d_ap, 0.0)
    d_an = jnp.min(jnp.where(is_pos, jnp.inf, dist), axis=1)
    d_an = jnp.where(jnp.any(~is_pos, axis=1), d_an, jnp.inf)
    return jnp.mean(jnp.maximum(d_ap - d_an + MARGIN, 0.0))


if __name__ == "__main__":
    key = jax.random.PRNGKey(0)
    k1, k2, k3, k4 = jax.random.split(key, 4)

    # small shape implied by the module: (batch, feat_dim) embeddings + labels
    emb_s = jax.random.normal(k1, (8, 32), dtype=jnp.float32)
    lab_s = jax.random.randint(k2, (8,), 0, 3, dtype=jnp.int32)
    loss_s = batch_hard_triplet_loss(emb_s, lab_s)
    jax.block_until_ready(loss_s)
    ref_s = _reference(emb_s, lab_s)
    assert jnp.allclose(loss_s, ref_s, atol=1e-5, rtol=1e-5), (loss_s, ref_s)

    # larger batch: exercises multiple row/column tiles, padding, and the
    # online-mining accumulation across column tiles.
    emb_l = jax.random.normal(k3, (900, 200), dtype=jnp.float32)
    lab_l = jax.random.randint(k4, (900,), 0, 20, dtype=jnp.int32)
    loss_l = batch_hard_triplet_loss(emb_l, lab_l)
    jax.block_until_ready(loss_l)
    ref_l = _reference(emb_l, lab_l)
    assert jnp.allclose(loss_l, ref_l, atol=1e-4, rtol=1e-4), (loss_l, ref_l)

    print("KERNEL_OK")
</pallas_src>

<mosaic_0001>
module attributes {stable_mosaic.version = 11 : i64} {
  func.func @_triplet_kernel(%arg0: i32, %arg1: i32, %arg2: memref<8x128xf32, #tpu.memory_space<vmem>>, %arg3: memref<128x128xf32, #tpu.memory_space<vmem>>, %arg4: memref<8x1xi32, #tpu.memory_space<vmem>>, %arg5: memref<1x128xi32, #tpu.memory_space<vmem>>, %arg6: memref<8x1xf32, #tpu.memory_space<vmem>>, %arg7: memref<8x1xf32, #tpu.memory_space<vmem>>, %arg8: memref<8x1xf32, #tpu.memory_space<vmem>>, %arg9: memref<8x1xf32, #tpu.memory_space<vmem>>) attributes {dimension_semantics = [#tpu.dimension_semantics<parallel>, #tpu.dimension_semantics<arbitrary>], iteration_bounds = array<i64: 1, 1>, scalar_prefetch = 0 : i64, scratch_operands = 2 : i64, tpu.core_type = #tpu.core_type<tc>, window_params = [{transform_indices = @transform_0, window_bounds = array<i64: 8, 128>}, {transform_indices = @transform_1, window_bounds = array<i64: 128, 128>}, {transform_indices = @transform_2, window_bounds = array<i64: 8, 1>}, {transform_indices = @transform_3, window_bounds = array<i64: 1, 128>}, {transform_indices = @transform_4, window_bounds = array<i64: 8, 1>}, {transform_indices = @transform_5, window_bounds = array<i64: 8, 1>}]} {
    %c0_i32 = arith.constant 0 : i32
    %0 = arith.cmpi eq, %arg1, %c0_i32 : i32
    %1 = arith.extui %0 : i1 to i32
    %c0_i32_0 = arith.constant 0 : i32
    %2 = arith.cmpi ne, %1, %c0_i32_0 : i32
    scf.if %2 {
      %cst_25 = arith.constant 0x7F800000 : f32
      %48 = vector.broadcast %cst_25 : f32 to vector<8x1xf32>
      %c0_26 = arith.constant 0 : index
      %c0_27 = arith.constant 0 : index
      %49 = vector.load %arg8[%c0_26, %c0_27] : memref<8x1xf32, #tpu.memory_space<vmem>>, vector<8x1xf32>
      tpu.vector_store %arg8[%c0_26, %c0_27], %48 {strides = array<i32>} : memref<8x1xf32, #tpu.memory_space<vmem>>, vector<8x1xf32>,
      %cst_28 = arith.constant 0xFF800000 : f32
      %50 = vector.broadcast %cst_28 : f32 to vector<8x1xf32>
      %c0_29 = arith.constant 0 : index
      %c0_30 = arith.constant 0 : index
      %51 = vector.load %arg9[%c0_29, %c0_30] : memref<8x1xf32, #tpu.memory_space<vmem>>, vector<8x1xf32>
      tpu.vector_store %arg9[%c0_29, %c0_30], %50 {strides = array<i32>} : memref<8x1xf32, #tpu.memory_space<vmem>>, vector<8x1xf32>,
    } else {
    }
    %c0 = arith.constant 0 : index
    %c0_1 = arith.constant 0 : index
    %3 = vector.load %arg2[%c0, %c0_1] : memref<8x128xf32, #tpu.memory_space<vmem>>, vector<8x128xf32>
    %c0_2 = arith.constant 0 : index
    %c0_3 = arith.constant 0 : index
    %4 = vector.load %arg3[%c0_2, %c0_3] : memref<128x128xf32, #tpu.memory_space<vmem>>, vector<128x128xf32>
    %cst = arith.constant dense<0.000000e+00> : vector<8x128xf32>
    %5 = tpu.matmul %3, %4, %cst {dimension_numbers = #tpu.dot_dimension_numbers<[1], [0], [0], [1], [0, 0, 1, 1], [], []>} : vector<8x128xf32>, vector<128x128xf32>, vector<8x128xf32> -> vector<8x128xf32>
    %6 = tpu.iota {dimensions = array<i32: 0>} : vector<8x1xi32>
    %c8_i32 = arith.constant 8 : i32
    %7 = arith.muli %arg0, %c8_i32 : i32
    %8 = vector.broadcast %7 : i32 to vector<8x1xi32>
    %9 = arith.addi %6, %8 : vector<8x1xi32>
    %10 = tpu.iota {dimensions = array<i32: 1>} : vector<1x128xi32>
    %c128_i32 = arith.constant 128 : i32
    %11 = arith.muli %arg1, %c128_i32 : i32
    %12 = vector.broadcast %11 : i32 to vector<1x128xi32>
    %13 = arith.addi %10, %12 : vector<1x128xi32>
    %14 = vector.broadcast %9 : vector<8x1xi32> to vector<8x128xi32>
    %15 = vector.broadcast %13 : vector<1x128xi32> to vector<8x128xi32>
    %16 = arith.cmpi eq, %14, %15 : vector<8x128xi32>
    %c8_i32_4 = arith.constant 8 : i32
    %17 = vector.broadcast %c8_i32_4 : i32 to vector<1x128xi32>
    %18 = arith.cmpi slt, %13, %17 : vector<1x128xi32>
    %c0_5 = arith.constant 0 : index
    %c0_6 = arith.constant 0 : index
    %19 = vector.load %arg4[%c0_5, %c0_6] : memref<8x1xi32, #tpu.memory_space<vmem>>, vector<8x1xi32>
    %c0_7 = arith.constant 0 : index
    %c0_8 = arith.constant 0 : index
    %20 = vector.load %arg5[%c0_7, %c0_8] : memref<1x128xi32, #tpu.memory_space<vmem>>, vector<1x128xi32>
    %21 = vector.broadcast %19 : vector<8x1xi32> to vector<8x128xi32>
    %22 = vector.broadcast %20 : vector<1x128xi32> to vector<8x128xi32>
    %23 = arith.cmpi eq, %21, %22 : vector<8x128xi32>
    %24 = vector.broadcast %18 : vector<1x128xi1> to vector<8x128xi1>
    %25 = arith.andi %23, %24 : vector<8x128xi1>
    %cst_9 = arith.constant dense<true> : vector<8x128xi1>
    %26 = arith.xori %16, %cst_9 : vector<8x128xi1>
    %27 = arith.andi %25, %26 : vector<8x128xi1>
    %cst_10 = arith.constant dense<true> : vector<8x128xi1>
    %28 = arith.xori %23, %cst_10 : vector<8x128xi1>
    %29 = vector.broadcast %18 : vector<1x128xi1> to vector<8x128xi1>
    %30 = arith.andi %28, %29 : vector<8x128xi1>
    %c0_11 = arith.constant 0 : index
    %c0_12 = arith.constant 0 : index
    %31 = vector.load %arg8[%c0_11, %c0_12] : memref<8x1xf32, #tpu.memory_space<vmem>>, vector<8x1xf32>
    %cst_13 = arith.constant 0x7F800000 : f32
    %32 = vector.broadcast %cst_13 : f32 to vector<8x128xf32>
    %33 = arith.select %27, %5, %32 : vector<8x128xi1>, vector<8x128xf32>
    %cst_14 = arith.constant dense<0x7F800000> : vector<8xf32>
    %34 = vector.multi_reduction <minimumf>, %33, %cst_14 [1] : vector<8x128xf32> to vector<8xf32>
    %35 = vector.shape_cast %34 : vector<8xf32> to vector<8x1xf32>
    %36 = arith.minimumf %31, %35 : vector<8x1xf32>
    %c0_15 = arith.constant 0 : index
    %c0_16 = arith.constant 0 : index
    %37 = vector.load %arg8[%c0_15, %c0_16] : memref<8x1xf32, #tpu.memory_space<vmem>>, vector<8x1xf32>
    tpu.vector_store %arg8[%c0_15, %c0_16], %36 {strides = array<i32>} : memref<8x1xf32, #tpu.memory_space<vmem>>, vector<8x1xf32>,
    %c0_17 = arith.constant 0 : index
    %c0_18 = arith.constant 0 : index
    %38 = vector.load %arg9[%c0_17, %c0_18] : memref<8x1xf32, #tpu.memory_space<vmem>>, vector<8x1xf32>
    %cst_19 = arith.constant 0xFF800000 : f32
    %39 = vector.broadcast %cst_19 : f32 to vector<8x128xf32>
    %40 = arith.select %30, %5, %39 : vector<8x128xi1>, vector<8x128xf32>
    %cst_20 = arith.constant dense<0xFF800000> : vector<8xf32>
    %41 = vector.multi_reduction <maximumf>, %40, %cst_20 [1] : vector<8x128xf32> to vector<8xf32>
    %42 = vector.shape_cast %41 : vector<8xf32> to vector<8x1xf32>
    %43 = arith.maximumf %38, %42 : vector<8x1xf32>
    %c0_21 = arith.constant 0 : index
    %c0_22 = arith.constant 0 : index
    %44 = vector.load %arg9[%c0_21, %c0_22] : memref<8x1xf32, #tpu.memory_space<vmem>>, vector<8x1xf32>
    tpu.vector_store %arg9[%c0_21, %c0_22], %43 {strides = array<i32>} : memref<8x1xf32, #tpu.memory_space<vmem>>, vector<8x1xf32>,
    %c0_i32_23 = arith.constant 0 : i32
    %45 = arith.cmpi eq, %arg1, %c0_i32_23 : i32
    %46 = arith.extui %45 : i1 to i32
    %c0_i32_24 = arith.constant 0 : i32
    %47 = arith.cmpi ne, %46, %c0_i32_24 : i32
    scf.if %47 {
      %c0_25 = arith.constant 0 : index
      %c0_26 = arith.constant 0 : index
      %48 = vector.load %arg6[%c0_25, %c0_26] : memref<8x1xf32, #tpu.memory_space<vmem>>, vector<8x1xf32>
      %cst_27 = arith.constant 1.000000e+00 : f32
      %49 = vector.broadcast %cst_27 : f32 to vector<8x1xf32>
      %50 = arith.cmpf ogt, %48, %49 : vector<8x1xf32>
      %cst_28 = arith.constant 8.000000e+00 : f32
      %51 = vector.broadcast %cst_28 : f32 to vector<8x1xf32>
      %52 = arith.cmpf olt, %48, %51 : vector<8x1xf32>
      %c8_i32_29 = arith.constant 8 : i32
      %53 = vector.broadcast %c8_i32_29 : i32 to vector<8x1xi32>
      %54 = arith.cmpi slt, %9, %53 : vector<8x1xi32>
      %c0_30 = arith.constant 0 : index
      %c0_31 = arith.constant 0 : index
      %55 = vector.load %arg8[%c0_30, %c0_31] : memref<8x1xf32, #tpu.memory_space<vmem>>, vector<8x1xf32>
      %cst_32 = arith.constant 2.000000e+00 : f32
      %56 = vector.broadcast %cst_32 : f32 to vector<8x1xf32>
      %57 = arith.mulf %56, %55 : vector<8x1xf32>
      %cst_33 = arith.constant 2.000000e+00 : f32
      %58 = vector.broadcast %cst_33 : f32 to vector<8x1xf32>
      %59 = arith.subf %58, %57 : vector<8x1xf32>
      %cst_34 = arith.constant 9.99999996E-13 : f32
      %60 = vector.broadcast %cst_34 : f32 to vector<8x1xf32>
      %61 = arith.maximumf %59, %60 : vector<8x1xf32>
      %62 = math.sqrt %61 : vector<8x1xf32>
      %c0_35 = arith.constant 0 : index
      %c0_36 = arith.constant 0 : index
      %63 = vector.load %arg9[%c0_35, %c0_36] : memref<8x1xf32, #tpu.memory_space<vmem>>, vector<8x1xf32>
      %cst_37 = arith.constant 2.000000e+00 : f32
      %64 = vector.broadcast %cst_37 : f32 to vector<8x1xf32>
      %65 = arith.mulf %64, %63 : vector<8x1xf32>
      %cst_38 = arith.constant 2.000000e+00 : f32
      %66 = vector.broadcast %cst_38 : f32 to vector<8x1xf32>
      %67 = arith.subf %66, %65 : vector<8x1xf32>
      %cst_39 = arith.constant 9.99999996E-13 : f32
      %68 = vector.broadcast %cst_39 : f32 to vector<8x1xf32>
      %69 = arith.maximumf %67, %68 : vector<8x1xf32>
      %70 = math.sqrt %69 : vector<8x1xf32>
      %cst_40 = arith.constant 0.000000e+00 : f32
      %71 = vector.broadcast %cst_40 : f32 to vector<8x1xf32>
      %72 = arith.select %50, %62, %71 : vector<8x1xi1>, vector<8x1xf32>
      %cst_41 = arith.constant 0x7F800000 : f32
      %73 = vector.broadcast %cst_41 : f32 to vector<8x1xf32>
      %74 = arith.select %52, %70, %73 : vector<8x1xi1>, vector<8x1xf32>
      %75 = arith.subf %72, %74 : vector<8x1xf32>
      %cst_42 = arith.constant 3.000000e-01 : f32
      %76 = vector.broadcast %cst_42 : f32 to vector<8x1xf32>
      %77 = arith.addf %75, %76 : vector<8x1xf32>
      %cst_43 = arith.constant 0.000000e+00 : f32
      %78 = vector.broadcast %cst_43 : f32 to vector<8x1xf32>
      %79 = arith.maximumf %77, %78 : vector<8x1xf32>
      %cst_44 = arith.constant 0.000000e+00 : f32
      %80 = vector.broadcast %cst_44 : f32 to vector<8x1xf32>
      %81 = arith.select %54, %79, %80 : vector<8x1xi1>, vector<8x1xf32>
      %c0_45 = arith.constant 0 : index
      %c0_46 = arith.constant 0 : index
      %82 = vector.load %arg7[%c0_45, %c0_46] : memref<8x1xf32, #tpu.memory_space<vmem>>, vector<8x1xf32>
      tpu.vector_store %arg7[%c0_45, %c0_46], %81 {strides = array<i32>} : memref<8x1xf32, #tpu.memory_space<vmem>>, vector<8x1xf32>,
    } else {
    }
    return
  }
  func.func @transform_0(%arg0: i32, %arg1: i32) -> (i32, i32) {
    %c0_i32 = arith.constant 0 : i32
    %c0_i32_0 = arith.constant 0 : i32
    return %arg0, %c0_i32 : i32, i32
  }
  func.func @transform_1(%arg0: i32, %arg1: i32) -> (i32, i32) {
    %c0_i32 = arith.constant 0 : i32
    %c0_i32_0 = arith.constant 0 : i32
    return %c0_i32, %arg1 : i32, i32
  }
  func.func @transform_2(%arg0: i32, %arg1: i32) -> (i32, i32) {
    %c0_i32 = arith.constant 0 : i32
    %c0_i32_0 = arith.constant 0 : i32
    return %arg0, %c0_i32 : i32, i32
  }
  func.func @transform_3(%arg0: i32, %arg1: i32) -> (i32, i32) {
    %c0_i32 = arith.constant 0 : i32
    %c0_i32_0 = arith.constant 0 : i32
    return %c0_i32, %arg1 : i32, i32
  }
  func.func @transform_4(%arg0: i32, %arg1: i32) -> (i32, i32) {
    %c0_i32 = arith.constant 0 : i32
    %c0_i32_0 = arith.constant 0 : i32
    return %arg0, %c0_i32 : i32, i32
  }
  func.func @transform_5(%arg0: i32, %arg1: i32) -> (i32, i32) {
    %c0_i32 = arith.constant 0 : i32
    %c0_i32_0 = arith.constant 0 : i32
    return %arg0, %c0_i32 : i32, i32
  }
}

</mosaic_0001>

<bundles_post_ra>
// kernel: tpu_custom_call.1
= control target key start
LH: loop header
LB: loop body
LE: loop exit
PB: predicated region body
PF: predicated region fallthrough
CT: control target
= control target key end

     0   :  { %10 = vsyncpa [#allocation5], 0  ;;  %s300_s18 = smov [#allocation4]   ;;  %s362_s0 = inlined_call_operand.vmem [shape: f32[8,128], index: 0, kind: input, shape index: {}]   ;;  %s363_s1 = inlined_call_operand.hbm [shape: f32[128,128], index: 1, kind: input, shape index: {}]   ;;  %s364_s2 = inlined_call_operand.vmem [shape: s32[8,1], index: 2, kind: input, shape index: {}]   ;;  %s365_s3 = inlined_call_operand.vmem [shape: s32[1,128], index: 3, kind: input, shape index: {}]   ;;  %s366_s4 = inlined_call_operand.vmem [shape: f32[8,1], index: 4, kind: input, shape index: {}]   ;;  %s367_s5 = inlined_call_operand.vmem [shape: f32[8,1], index: 5, kind: output, shape index: {}]  }
   0x1   :  { %s18_s19 = sshll.u32 %s300_s18, 4  ;;  %s19_s19 = int_to_ptr.vmem [resolvable:$true] %s18_s19 }
   0x2   :  { %s286_s20 = scalar_lea.vmem %s19_s19, 2048  ;;  %p291_p1 = scmp.lt.s32.totalorder %s19_s19, %s19_s19 }
   0x3   :  { %p287_p0 = scmp.ne.s32.totalorder %s19_s19, %s286_s20  ;;  %p292_p2 = scmp.lt.s32.totalorder %s286_s20, %s286_s20 }
   0x5   :  { %p293_p3 = por %p292_p2, %p291_p1 }
   0x7   :  { %p294_p4 = pnand %p293_p3, %p287_p0 }
   0x9   :  { %297 = shalt.err (!%p294_p4)
}
   0xa   :  { %s301_s21 = smov 128   ;;  %s302_s22 = smov 8  }
   0xb   :  { %24 = dma.hbm_to_vmem [thread:$0]  %s363_s1, 2048, %s19_s19, [#allocation5], %s301_s21, %s301_s21, %s302_s22  }
   0xc   :  { %298 = dma.done.wait [#allocation5], 2048  }
   0xd   :  { %299 = vsyncadd [#allocation5], 4294965248  ;;  %v303_v0 = vmov 0.0   ;;  %vm304_vm0 = vmmov 0   ;;  %v305_v1 = vmov 0   ;;  %v57_v2 = vld [vmem:[#allocation4 + $0x78] sm:$0xff]  ;;  %v128_v21 = vlaneseq }
   0xe   :  { %229 = vmatprep.subr.mxu0 %v303_v0  ;;  %261 = vmatprep.mubr.msk.f32.mxu0 %vm304_vm0, %v303_v0  ;;  %v56_v3 = vld [vmem:[#allocation4 + $0x70] sm:$0xff]  ;;  %v55_v4 = vld [vmem:[#allocation4 + $0x68] sm:$0xff]  ;;  %v54_v5 = vld [vmem:[#allocation4 + $0x60] sm:$0xff]  ;;  %vm38_vm1 = vcmask 7168   ;;  %v306_v20 = vmov -inf   ;;  %vm307_vm5 = vmmov 1  }
   0xf   :  { %273 = vset.pattern.permute.xlu0 %v305_v1  ;;  %230 = vmatpush3.msra.mxu0 %v57_v2  ;;  %v140_v6 = vld [vmem:[%s364_s2] sm:$0xff]  ;;  %v53_v7 = vld [vmem:[#allocation4 + $0x58] sm:$0xff]  ;;  %v51_v9 = vld [vmem:[#allocation4 + $0x48] sm:$0xff]  ;;  %40 = vst.msk [vmem:[#allocation3] sm:$0xff] %vm38_vm1, %v306_v20  ;;  %v134_v22 = vand.u32 127, %v128_v21  ;;  %v129_v23 = vshrl.u32 %v128_v21, 7 }
  0x10   :  { %231 = vmatprep.subr.mxu0 %v303_v0  ;;  %143 = vperm.xlu0 %273, %v140_v6   ;;  %v52_v8 = vld [vmem:[#allocation4 + $0x50] sm:$0xff]  ;;  %v50_v10 = vld [vmem:[#allocation4 + $0x40] sm:$0xff]  ;;  %v49_v11 = vld [vmem:[#allocation4 + $0x38] sm:$0xff]  ;;  %v308_v30 = vmov inf  }
  0x11   :  { %232 = vmatpush3.msra.mxu0 %v56_v3  ;;  %v48_v12 = vld [vmem:[#allocation4 + $0x30] sm:$0xff]  ;;  %v47_v13 = vld [vmem:[#allocation4 + $0x28] sm:$0xff]  ;;  %v46_v14 = vld [vmem:[#allocation4 + $0x20] sm:$0xff]  ;;  %vm138_vm2 = vcmp.eq.s32.totalorder %v129_v23, %v134_v22  ;;  %vm139_vm4 = vcmp.lt.s32.totalorder %v134_v22, 8  ;;  %39 = vst.msk [vmem:[#allocation2] sm:$0xff] %vm38_vm1, %v308_v30 }
  0x12   :  { %233 = vmatprep.subr.mxu0 %v303_v0  ;;  %v45_v15 = vld [vmem:[#allocation4 + $0x18] sm:$0xff]  ;;  %v44_v16 = vld [vmem:[#allocation4 + $0x10] sm:$0xff]  ;;  %v43_v17 = vld [vmem:[#allocation4 + $0x8] sm:$0xff] }
  0x13   :  { %234 = vmatpush3.msra.mxu0 %v55_v4  ;;  %v42_v18 = vld [vmem:[#allocation4] sm:$0xff]  ;;  %v41_v19 = vld [vmem:[%s362_s0] sm:$0xff]  ;;  %vm153_vm6 = vmxor %vm138_vm2, %vm307_vm5 }
  0x14   :  { %235 = vmatprep.subr.mxu0 %v303_v0  ;;  %v211_v24 = vld [vmem:[%s365_s3] ss:$0 sm:$0xff] }
  0x15   :  { %236 = vmatpush3.msra.mxu0 %v54_v5  ;;  %v173_v45 = vld [vmem:[%s366_s4] sm:$0xff] }
  0x16   :  { %237 = vmatprep.subr.mxu0 %v303_v0  ;;  %v164_v31 = vld [vmem:[#allocation3] sm:$0xff]  ;;  %vm175_vm11 = vcmp.lt.f32.partialorder %v173_v45, 8.0  ;;  %vm174_vm13 = vcmp.gt.f32.partialorder %v173_v45, 1.0 }
  0x17   :  { %238 = vmatpush3.msra.mxu0 %v53_v7 }
  0x18   :  { %239 = vmatprep.subr.mxu0 %v303_v0  ;;  %v157_v32 = vld [vmem:[#allocation2] sm:$0xff] }
  0x19   :  { %240 = vmatpush3.msra.mxu0 %v52_v8 }
  0x1a   :  { %241 = vmatprep.subr.mxu0 %v303_v0 }
  0x1b   :  { %242 = vmatpush3.msra.mxu0 %v51_v9 }
  0x1c   :  { %243 = vmatprep.subr.mxu0 %v303_v0 }
  0x1d   :  { %244 = vmatpush3.msra.mxu0 %v50_v10 }
  0x1e   :  { %245 = vmatprep.subr.mxu0 %v303_v0 }
  0x1f   :  { %246 = vmatpush3.msra.mxu0 %v49_v11 }
  0x20   :  { %247 = vmatprep.subr.mxu0 %v303_v0 }
  0x21   :  { %248 = vmatpush3.msra.mxu0 %v48_v12 }
  0x22   :  { %249 = vmatprep.subr.mxu0 %v303_v0 }
  0x23   :  { %250 = vmatpush3.msra.mxu0 %v47_v13 }
  0x24   :  { %251 = vmatprep.subr.mxu0 %v303_v0 }
  0x25   :  { %252 = vmatpush3.msra.mxu0 %v46_v14 }
  0x26   :  { %253 = vmatprep.subr.mxu0 %v303_v0 }
  0x27   :  { %254 = vmatpush3.msra.mxu0 %v45_v15 }
  0x28   :  { %255 = vmatprep.subr.mxu0 %v303_v0 }
  0x29   :  { %256 = vmatpush3.msra.mxu0 %v44_v16 }
  0x2a   :  { %257 = vmatprep.subr.mxu0 %v303_v0 }
  0x2b   :  { %258 = vmatpush3.msra.mxu0 %v43_v17 }
  0x2c   :  { %259 = vmatprep.subr.mxu0 %v303_v0 }
  0x2d   :  { %260 = vmatpush3.msra.mxu0 %v42_v18 }
  0x2e   :  { %262 = vmatmul.mubr.f32.vlgmr.msra.gmra.mxu0 %v41_v19 }
  0x8b   :  { %v144_v25 = vpop.permute.xlu0 %143 }
  0x8c   :  { %vm149_vm3 = vcmp.eq.s32.totalorder %v144_v25, %v211_v24 }
  0x8d   :  { %vm155_vm7 = vmxor %vm149_vm3, %vm307_vm5 }
  0x8e   :  { %vm152_vm8 = vmand %vm149_vm3, %vm139_vm4 }
  0x8f   :  { %vm156_vm9 = vmand %vm155_vm7, %vm139_vm4 }
  0x90   :  { %vm154_vm10 = vmand %vm152_vm8, %vm153_vm6 }
  0xee   :  { %v124_v26 = vpop.f32.mrf.mxu0 }
  0xef   :  { %v165_v27 = vsel %vm156_vm9, %v124_v26, -inf  ;;  %v158_v28 = vsel %vm154_vm10, %v124_v26, inf }
  0xf0   :  { %166 = vmax.xlane.f32.xlu1 %v165_v27  ;;  %159 = vmin.xlane.f32.xlu0 %v158_v28  ;;  %v263_v29 = vpop.f32.mrf.mxu0 }
 0x179   :  { %v167_v33 = vpop.xlane.xlu1 %166  ;;  %v160_v34 = vpop.xlane.xlu0 %159 }
 0x17a   :  { %v168_v35 = vmax.f32 %v164_v31, %v167_v33  ;;  %v161_v36 = vmin.f32 %v157_v32, %v160_v34 }
 0x17c   :  { %169 = vst.msk [vmem:[#allocation3] sm:$0xff] %vm38_vm1, %v168_v35  ;;  %163 = vst.msk [vmem:[#allocation2] sm:$0xff] %vm38_vm1, %v161_v36 }
 0x183   :  { %v188_v37 = vld [vmem:[#allocation3] sm:$0xff]  ;;  %v177_v38 = vld [vmem:[#allocation2] sm:$0xff] }
 0x184   :  { %v189_v39 = vmul.f32 2.0, %v188_v37  ;;  %v178_v40 = vmul.f32 2.0, %v177_v38 }
 0x186   :  { %v190_v41 = vsub.f32 2.0, %v189_v39  ;;  %v179_v42 = vsub.f32 2.0, %v178_v40 }
 0x188   :  { %v191_v43 = vmax.f32 %v190_v41, 1e-12  ;;  %v180_v44 = vmax.f32 %v179_v42, 1e-12 }
 0x18a   :  { %274 = vrsqrt.f32 %v191_v43  ;;  %vm194_vm12 = vcmp.eq.f32.partialorder %v191_v43, inf  ;;  %v197_v49 = vand.u32 2147483648, %v191_v43  ;;  %vm196_vm14 = vcmp.eq.f32.partialorder %v191_v43, 0.0 }
 0x18b   :  { %276 = vrsqrt.f32 %v180_v44  ;;  %vm183_vm15 = vcmp.eq.f32.partialorder %v180_v44, inf  ;;  %v186_v52 = vand.u32 2147483648, %v180_v44  ;;  %vm185_vm0 = vcmp.eq.f32.partialorder %v180_v44, 0.0 }
 0x197   :  { %v275_v46 = vpop.eup %274 }
 0x198   :  { %v277_v47 = vpop.eup %276  ;;  %v193_v48 = vmul.f32 %v275_v46, %v191_v43 }
 0x199   :  { %v182_v50 = vmul.f32 %v277_v47, %v180_v44 }
 0x19a   :  { %v195_v51 = vsel %vm194_vm12, %v191_v43, %v193_v48 }
 0x19b   :  { %v198_v53 = vsel %vm196_vm14, %v197_v49, %v195_v51  ;;  %v184_v54 = vsel %vm183_vm15, %v180_v44, %v182_v50 }
 0x19c   :  { %v200_v55 = vsel %vm175_vm11, %v198_v53, inf  ;;  %v187_v56 = vsel %vm185_vm0, %v186_v52, %v184_v54 }
 0x19d   :  { %v199_v57 = vsel %vm174_vm13, %v187_v56, 0.0 }
 0x19e   :  { %v201_v58 = vsub.f32 %v199_v57, %v200_v55 }
 0x1a0   :  { %v202_v59 = vadd.f32 0.3, %v201_v58 }
 0x1a2   :  { %v203_v60 = vmax.f32 %v202_v59, 0.0 }
 0x1a4   :  { %205 = vst.msk [vmem:[%s367_s5] sm:$0xff] %vm38_vm1, %v203_v60 }
 0x1a5   :  { %210 = vsyncpa [#allocation5], 1 }

</bundles_post_ra>
